<compile_context>
chip_gen: v7x
topology: tpu7x:2x2x1
jax: 0.10.0
libtpu: 0.0.40
codegen_flags: <defaults>
</compile_context>

<pallas_src>
import functools
import math

import jax
import jax.numpy as jnp
from jax.experimental import pallas as pl
from jax.experimental.pallas import tpu as pltpu


# ---------------------------------------------------------------------------
# Kernel A: rotatory attention over neighbouring slices (batched, single call).
# TODO(synk): DynamicRotatoryAttentionModule source was not provided; implemented
#   as scaled-dot-product cross-attention where the target slice attends over the
#   concatenated left/right neighbour slices (1/sqrt(dim) folded into wq outside).
# ---------------------------------------------------------------------------
def _rag_attention_kernel(t_ref, c_ref, wq_ref, wk_ref, wv_ref,
                          bq_ref, bk_ref, bv_ref, o_ref):
    M, T, D = t_ref.shape
    _, C, _ = c_ref.shape
    # 2D projections (T, C are multiples of 8 -> layout-friendly reshapes).
    t2 = t_ref[...].reshape(M * T, D)
    c2 = c_ref[...].reshape(M * C, D)
    q = (jnp.dot(t2, wq_ref[...], preferred_element_type=jnp.float32)
         + bq_ref[...]).reshape(M, T, D)
    k = (jnp.dot(c2, wk_ref[...], preferred_element_type=jnp.float32)
         + bk_ref[...]).reshape(M, C, D)
    v = (jnp.dot(c2, wv_ref[...], preferred_element_type=jnp.float32)
         + bv_ref[...]).reshape(M, C, D)
    # batched attention (scale already folded into wq/bq)
    s = jnp.einsum('mtd,mcd->mtc', q, k, preferred_element_type=jnp.float32)
    m = jnp.max(s, axis=-1, keepdims=True)
    p = jnp.exp(s - m)
    denom = jnp.sum(p, axis=-1, keepdims=True)
    o = jnp.einsum('mtc,mcd->mtd', p, v, preferred_element_type=jnp.float32)
    o_ref[...] = (o * pl.reciprocal(denom, approx=True)).astype(o_ref.dtype)


def pallas_rag_attention(targets, contexts, wq, wk, wv, bq, bk, bv):
    M, T, D = targets.shape
    return pl.pallas_call(
        _rag_attention_kernel,
        out_shape=jax.ShapeDtypeStruct((M, T, D), jnp.float32),
    )(targets.astype(jnp.float32), contexts.astype(jnp.float32),
      wq.astype(jnp.float32), wk.astype(jnp.float32), wv.astype(jnp.float32),
      bq.reshape(1, D).astype(jnp.float32),
      bk.reshape(1, D).astype(jnp.float32),
      bv.reshape(1, D).astype(jnp.float32))


# ---------------------------------------------------------------------------
# Kernel B: fused ConvTranspose2d(k=2, s=2) + bias + skip-add + ReLU + Sigmoid.
#   Grid = (sample, tap_a).  For tap a, the matmul columns are ordered (b, o) so
#   the output array (N, H, 2, W, 2*outc) is a FREE reshape of NHWC z.
# ---------------------------------------------------------------------------
def _upconv_fused_kernel(x_ref, w_ref, b_ref, s_ref, o_ref):
    # x: (H*W, inc) bf16; w: (inc, 2*outc) bf16; b: (1, 2*outc) f32; s: skip f32.
    y = jnp.dot(x_ref[0], w_ref[0], preferred_element_type=jnp.float32)
    y = y + b_ref[...]                                   # (H*W, 2*outc)
    s = s_ref[0, :, 0, :, :]                             # (H, W, 2*outc) f32
    H, W, C2 = s.shape
    z = jnp.maximum(y.reshape(H, W, C2) + s, 0.0)        # relu(up + skip)
    z = pl.reciprocal(1.0 + jnp.exp(-z), approx=True)    # sigmoid (exp+rcp on EUP)
    o_ref[0, :, 0, :, :] = z.astype(o_ref.dtype)


def pallas_upconv_fused(xr, wup2, bias_bo, s6):
    N, H, _, W, C2 = s6.shape
    inc = xr.shape[-1]
    return pl.pallas_call(
        _upconv_fused_kernel,
        out_shape=jax.ShapeDtypeStruct((N, H, 2, W, C2), jnp.bfloat16),
        grid_spec=pltpu.PrefetchScalarGridSpec(
            num_scalar_prefetch=0,
            grid=(N, 2),
            in_specs=[
                pl.BlockSpec((1, H * W, inc), lambda n, a: (n, 0, 0)),
                pl.BlockSpec((1, inc, C2), lambda n, a: (a, 0, 0)),
                pl.BlockSpec((1, C2), lambda n, a: (0, 0)),
                pl.BlockSpec((1, H, 1, W, C2), lambda n, a: (n, 0, a, 0, 0)),
            ],
            out_specs=pl.BlockSpec((1, H, 1, W, C2), lambda n, a: (n, 0, a, 0, 0)),
        ),
        compiler_params=pltpu.CompilerParams(
            dimension_semantics=("parallel", "parallel"),
            vmem_limit_bytes=32 * 1024 * 1024),
    )(xr, wup2, bias_bo, s6)


# ---------------------------------------------------------------------------
# Kernel C: direct 3x3 conv (padding=1) + folded BatchNorm + ReLU (no im2col).
#   Input is a flattened zero-padded NHWC slab per sample; each of the 9 taps is a
#   row-shifted 2D slice matmul'd against its (cin, outc) weight and accumulated
#   in f32.  The Wc..Wc+1 "junk" columns of each padded row are discarded outside.
# TODO(synk): for very large spatial extents, tile H with halo DMAs instead of one
#   whole-sample block per grid step.
# ---------------------------------------------------------------------------
def _conv3x3_bn_relu_kernel(x_ref, w_ref, scale_ref, shift_ref, o_ref, *, Hc, Wp):
    L = Hc * Wp
    acc = None
    for kh in range(3):
        for kw in range(3):
            start = kh * Wp + kw
            xs = x_ref[0, start:start + L, :]               # (L, cin) bf16
            wk = w_ref[kh, kw]                              # (cin, outc) bf16
            t = jnp.dot(xs, wk, preferred_element_type=jnp.float32)
            acc = t if acc is None else acc + t
    out = jnp.maximum(acc * scale_ref[...] + shift_ref[...], 0.0)
    o_ref[0] = out.astype(o_ref.dtype)


def pallas_conv3x3_bn_relu(xpad2, wc4, scale, shift, Hc, Wc):
    N, Lp, cin = xpad2.shape
    outc = wc4.shape[-1]
    Wp = Wc + 2
    L = Hc * Wp
    kernel = functools.partial(_conv3x3_bn_relu_kernel, Hc=Hc, Wp=Wp)
    return pl.pallas_call(
        kernel,
        out_shape=jax.ShapeDtypeStruct((N, L, outc), jnp.float32),
        grid_spec=pltpu.PrefetchScalarGridSpec(
            num_scalar_prefetch=0,
            grid=(N,),
            in_specs=[
                pl.BlockSpec((1, Lp, cin), lambda n: (n, 0, 0)),
                pl.BlockSpec((3, 3, cin, outc), lambda n: (0, 0, 0, 0)),
                pl.BlockSpec((1, outc), lambda n: (0, 0)),
                pl.BlockSpec((1, outc), lambda n: (0, 0)),
            ],
            out_specs=pl.BlockSpec((1, L, outc), lambda n: (n, 0, 0)),
        ),
        compiler_params=pltpu.CompilerParams(
            dimension_semantics=("parallel",),
            vmem_limit_bytes=32 * 1024 * 1024),
    )(xpad2, wc4, scale, shift)


# ---------------------------------------------------------------------------
# decoder_block forward
# ---------------------------------------------------------------------------
def decoder_block_forward(params, x, s, *, window_size):
    N, inc, H, W = x.shape
    fd = H * W
    reach = (window_size - 1) // 2
    outc = params["up_b"].shape[0]
    Hc, Wc = 2 * H, 2 * W

    x = x.astype(jnp.float32)
    s = s.astype(jnp.float32)

    # ---- rotatory attention over neighbouring batch samples (middle indices) ----
    if reach > 0 and (N - 2 * reach) > 0:
        mids = list(range(reach, N - reach))
        targets = jnp.stack([x[i].reshape(inc, fd).T for i in mids])        # (M, fd, inc)
        ctxs = jnp.stack([
            jnp.concatenate(
                [x[j].reshape(inc, fd).T
                 for j in list(range(i - reach, i)) + list(range(i + 1, i + reach + 1))],
                axis=0)
            for i in mids])                                                 # (M, 2*reach*fd, inc)
        scale = 1.0 / math.sqrt(inc)                                        # folded into wq/bq
        attn = pallas_rag_attention(targets, ctxs,
                                    params["wq"] * scale, params["wk"], params["wv"],
                                    params["bq"] * scale, params["bk"], params["bv"])
        # torch does output.view(inc, sqrt(fd), sqrt(fd)) -> raw row-major reshape
        mid_maps = attn.reshape(len(mids), inc, H, W)
        new_output = jnp.concatenate([x[:reach], mid_maps, x[N - reach:]], axis=0)
    else:
        new_output = x

    # ---- fused ConvTranspose2d(inc->outc, k=2, s=2) + skip add + ReLU + Sigmoid ----
    xr = new_output.transpose(0, 2, 3, 1).reshape(N, H * W, inc).astype(jnp.bfloat16)
    # up_w (inc, outc, 2, 2) -> per-tap-a weight with columns ordered (b, o)
    wup2 = params["up_w"].transpose(2, 0, 3, 1).reshape(2, inc, 2 * outc).astype(jnp.bfloat16)
    bias_bo = jnp.tile(params["up_b"], 2).reshape(1, 2 * outc).astype(jnp.float32)
    s_nhwc = s.transpose(0, 2, 3, 1)                                        # (N, 2H, 2W, outc) f32
    s6 = s_nhwc.reshape(N, H, 2, W, 2 * outc)                               # free reshape
    z6 = pallas_upconv_fused(xr, wup2, bias_bo, s6)                         # (N, H, 2, W, 2*outc) bf16
    z_nhwc = z6.reshape(N, Hc, Wc, outc)                                    # free reshape -> NHWC z

    # ---- concat channels, then conv_block: 3x3 conv + BatchNorm + ReLU ----
    # TODO(synk): BatchNorm2d evaluated in inference mode (running stats); training-mode
    #   batch statistics are not reproduced here.
    cat = jnp.concatenate([z_nhwc, s_nhwc.astype(jnp.bfloat16)], axis=-1)   # (N, Hc, Wc, 2*outc)
    # zero-pad H by (1,2) / W by (1,1): the extra trailing row keeps every in-kernel
    # row-shifted tap slice in-bounds; it never touches valid output rows.
    cat_pad = jnp.pad(cat, ((0, 0), (1, 2), (1, 1), (0, 0)))
    Wp = Wc + 2
    cat2 = cat_pad.reshape(N, (Hc + 3) * Wp, 2 * outc)                      # free reshape
    wc4 = params["c1_w"].transpose(2, 3, 1, 0).astype(jnp.bfloat16)         # (kh, kw, cin, outc)
    bn_scale = params["bn_gamma"] / jnp.sqrt(params["bn_var"] + 1e-5)
    bn_shift = params["bn_beta"] - params["bn_mean"] * bn_scale
    scale2 = bn_scale.reshape(1, outc).astype(jnp.float32)
    shift2 = (params["c1_b"] * bn_scale + bn_shift).reshape(1, outc).astype(jnp.float32)

    outp = pallas_conv3x3_bn_relu(cat2, wc4, scale2, shift2, Hc, Wc)        # (N, Hc*Wp, outc)
    out = outp.reshape(N, Hc, Wp, outc)[:, :, :Wc, :].transpose(0, 3, 1, 2) # drop junk cols
    return out


# ---------------------------------------------------------------------------
# deterministic parameter init (synthetic; no checkpoint load)
# ---------------------------------------------------------------------------
def init_params(key, inc, outc):
    keys = jax.random.split(key, 7)

    def nrm(k, shape, scale=0.1):
        return scale * jax.random.normal(k, shape, jnp.float32)

    return {
        # rotatory attention projections (embed_dim = inc)
        "wq": nrm(keys[0], (inc, inc)),
        "wk": nrm(keys[1], (inc, inc)),
        "wv": nrm(keys[2], (inc, inc)),
        "bq": jnp.zeros((inc,), jnp.float32),
        "bk": jnp.zeros((inc,), jnp.float32),
        "bv": jnp.zeros((inc,), jnp.float32),
        # ConvTranspose2d(inc, outc, k=2, s=2): weight (inc, outc, 2, 2), bias (outc,)
        "up_w": nrm(keys[3], (inc, outc, 2, 2)),
        "up_b": nrm(keys[4], (outc,), 0.01),
        # conv_block: Conv2d(2*outc, outc, 3, pad=1) + BatchNorm2d(outc)
        "c1_w": nrm(keys[5], (outc, 2 * outc, 3, 3)),
        "c1_b": nrm(keys[6], (outc,), 0.01),
        "bn_gamma": jnp.ones((outc,), jnp.float32),
        "bn_beta": jnp.zeros((outc,), jnp.float32),
        "bn_mean": jnp.zeros((outc,), jnp.float32),
        "bn_var": jnp.ones((outc,), jnp.float32),
    }


if __name__ == "__main__":
    key = jax.random.PRNGKey(0)
    # small shapes consistent with the module:
    #   x: (n_sample=4, inc=8, 8, 8)  -> flattened_dim = 64, window_size = 3
    #   s: (4, outc=4, 16, 16)        (skip connection at 2x spatial resolution)
    N, inc, outc, H, W = 4, 8, 4, 8, 8
    window_size = 3
    kx, ks, kp = jax.random.split(key, 3)
    x = jax.random.normal(kx, (N, inc, H, W), jnp.float32)
    s = jax.random.normal(ks, (N, outc, 2 * H, 2 * W), jnp.float32)
    params = init_params(kp, inc, outc)

    out = decoder_block_forward(params, x, s, window_size=window_size)
    out = jax.block_until_ready(out)
    assert out.shape == (N, outc, 2 * H, 2 * W), out.shape
    assert bool(jnp.all(jnp.isfinite(out)))
    print("KERNEL_OK")
</pallas_src>

<mosaic_0001>
module attributes {stable_mosaic.version = 11 : i64} {
  func.func @_rag_attention_kernel(%arg0: memref<2x64x8xf32, #tpu.memory_space<vmem>>, %arg1: memref<2x128x8xf32, #tpu.memory_space<vmem>>, %arg2: memref<8x8xf32, #tpu.memory_space<vmem>>, %arg3: memref<8x8xf32, #tpu.memory_space<vmem>>, %arg4: memref<8x8xf32, #tpu.memory_space<vmem>>, %arg5: memref<1x8xf32, #tpu.memory_space<vmem>>, %arg6: memref<1x8xf32, #tpu.memory_space<vmem>>, %arg7: memref<1x8xf32, #tpu.memory_space<vmem>>, %arg8: memref<2x64x8xf32, #tpu.memory_space<vmem>>) attributes {dimension_semantics = [], scalar_prefetch = 0 : i64, scratch_operands = 0 : i64, tpu.core_type = #tpu.core_type<tc>} {
    %c0 = arith.constant 0 : index
    %c0_0 = arith.constant 0 : index
    %c0_1 = arith.constant 0 : index
    %0 = vector.load %arg0[%c0, %c0_0, %c0_1] : memref<2x64x8xf32, #tpu.memory_space<vmem>>, vector<2x64x8xf32>
    %1 = vector.shape_cast %0 : vector<2x64x8xf32> to vector<128x8xf32>
    %c0_2 = arith.constant 0 : index
    %c0_3 = arith.constant 0 : index
    %c0_4 = arith.constant 0 : index
    %2 = vector.load %arg1[%c0_2, %c0_3, %c0_4] : memref<2x128x8xf32, #tpu.memory_space<vmem>>, vector<2x128x8xf32>
    %3 = vector.shape_cast %2 : vector<2x128x8xf32> to vector<256x8xf32>
    %c0_5 = arith.constant 0 : index
    %c0_6 = arith.constant 0 : index
    %4 = vector.load %arg2[%c0_5, %c0_6] : memref<8x8xf32, #tpu.memory_space<vmem>>, vector<8x8xf32>
    %cst = arith.constant dense<0.000000e+00> : vector<128x8xf32>
    %5 = tpu.matmul %1, %4, %cst {dimension_numbers = #tpu.dot_dimension_numbers<[1], [0], [0], [1], [0, 0, 1, 1], [], []>} : vector<128x8xf32>, vector<8x8xf32>, vector<128x8xf32> -> vector<128x8xf32>
    %c0_7 = arith.constant 0 : index
    %c0_8 = arith.constant 0 : index
    %6 = vector.load %arg5[%c0_7, %c0_8] : memref<1x8xf32, #tpu.memory_space<vmem>>, vector<1x8xf32>
    %7 = vector.broadcast %6 : vector<1x8xf32> to vector<128x8xf32>
    %8 = arith.addf %5, %7 : vector<128x8xf32>
    %9 = vector.shape_cast %8 : vector<128x8xf32> to vector<2x64x8xf32>
    %c0_9 = arith.constant 0 : index
    %c0_10 = arith.constant 0 : index
    %10 = vector.load %arg3[%c0_9, %c0_10] : memref<8x8xf32, #tpu.memory_space<vmem>>, vector<8x8xf32>
    %cst_11 = arith.constant dense<0.000000e+00> : vector<256x8xf32>
    %11 = tpu.matmul %3, %10, %cst_11 {dimension_numbers = #tpu.dot_dimension_numbers<[1], [0], [0], [1], [0, 0, 1, 1], [], []>} : vector<256x8xf32>, vector<8x8xf32>, vector<256x8xf32> -> vector<256x8xf32>
    %c0_12 = arith.constant 0 : index
    %c0_13 = arith.constant 0 : index
    %12 = vector.load %arg6[%c0_12, %c0_13] : memref<1x8xf32, #tpu.memory_space<vmem>>, vector<1x8xf32>
    %13 = vector.broadcast %12 : vector<1x8xf32> to vector<256x8xf32>
    %14 = arith.addf %11, %13 : vector<256x8xf32>
    %15 = vector.shape_cast %14 : vector<256x8xf32> to vector<2x128x8xf32>
    %c0_14 = arith.constant 0 : index
    %c0_15 = arith.constant 0 : index
    %16 = vector.load %arg4[%c0_14, %c0_15] : memref<8x8xf32, #tpu.memory_space<vmem>>, vector<8x8xf32>
    %cst_16 = arith.constant dense<0.000000e+00> : vector<256x8xf32>
    %17 = tpu.matmul %3, %16, %cst_16 {dimension_numbers = #tpu.dot_dimension_numbers<[1], [0], [0], [1], [0, 0, 1, 1], [], []>} : vector<256x8xf32>, vector<8x8xf32>, vector<256x8xf32> -> vector<256x8xf32>
    %c0_17 = arith.constant 0 : index
    %c0_18 = arith.constant 0 : index
    %18 = vector.load %arg7[%c0_17, %c0_18] : memref<1x8xf32, #tpu.memory_space<vmem>>, vector<1x8xf32>
    %19 = vector.broadcast %18 : vector<1x8xf32> to vector<256x8xf32>
    %20 = arith.addf %17, %19 : vector<256x8xf32>
    %21 = vector.shape_cast %20 : vector<256x8xf32> to vector<2x128x8xf32>
    "tpu.trace_start"() <{level = 10 : i32, message = "mtd,mcd->mtc"}> : () -> ()
    %cst_19 = arith.constant dense<0.000000e+00> : vector<2x64x128xf32>
    %22 = tpu.matmul %9, %15, %cst_19 {dimension_numbers = #tpu.dot_dimension_numbers<[2], [2], [1], [1], [0, 0, 0, 1, 1, 1], [0], [0]>} : vector<2x64x8xf32>, vector<2x128x8xf32>, vector<2x64x128xf32> -> vector<2x64x128xf32>
    "tpu.trace_stop"() : () -> ()
    %cst_20 = arith.constant dense<0xFF800000> : vector<2x64xf32>
    %23 = vector.multi_reduction <maximumf>, %22, %cst_20 [2] : vector<2x64x128xf32> to vector<2x64xf32>
    %24 = vector.shape_cast %23 : vector<2x64xf32> to vector<2x64x1xf32>
    %25 = vector.broadcast %24 : vector<2x64x1xf32> to vector<2x64x128xf32>
    %26 = arith.subf %22, %25 : vector<2x64x128xf32>
    %27 = math.exp %26 : vector<2x64x128xf32>
    %cst_21 = arith.constant dense<0.000000e+00> : vector<2x64xf32>
    %28 = vector.multi_reduction <add>, %27, %cst_21 [2] : vector<2x64x128xf32> to vector<2x64xf32>
    %29 = vector.shape_cast %28 : vector<2x64xf32> to vector<2x64x1xf32>
    "tpu.trace_start"() <{level = 10 : i32, message = "mtc,mcd->mtd"}> : () -> ()
    %cst_22 = arith.constant dense<0.000000e+00> : vector<2x64x8xf32>
    %30 = tpu.matmul %27, %21, %cst_22 {dimension_numbers = #tpu.dot_dimension_numbers<[2], [1], [1], [2], [0, 0, 0, 1, 1, 2], [0], [0]>} : vector<2x64x128xf32>, vector<2x128x8xf32>, vector<2x64x8xf32> -> vector<2x64x8xf32>
    "tpu.trace_stop"() : () -> ()
    %31 = tpu.reciprocal %29 {approx = true} : vector<2x64x1xf32> -> vector<2x64x1xf32>
    %32 = vector.broadcast %31 : vector<2x64x1xf32> to vector<2x64x8xf32>
    %33 = arith.mulf %30, %32 : vector<2x64x8xf32>
    %c0_23 = arith.constant 0 : index
    %c0_24 = arith.constant 0 : index
    %c0_25 = arith.constant 0 : index
    %34 = vector.load %arg8[%c0_23, %c0_24, %c0_25] : memref<2x64x8xf32, #tpu.memory_space<vmem>>, vector<2x64x8xf32>
    tpu.vector_store %arg8[%c0_23, %c0_24, %c0_25], %33 {strides = array<i32>} : memref<2x64x8xf32, #tpu.memory_space<vmem>>, vector<2x64x8xf32>,
    return
  }
}

</mosaic_0001>

<bundles_post_ra>
// kernel: tpu_custom_call.1
= control target key start
LH: loop header
LB: loop body
LE: loop exit
PB: predicated region body
PF: predicated region fallthrough
CT: control target
= control target key end

     0   :  { %vm85_vm0 = vcmask 64512   ;;  %s3034_s2 = inlined_call_operand.vmem [shape: f32[8,8], index: 2, kind: input, shape index: {}]   ;;  %s3035_s0 = inlined_call_operand.vmem [shape: f32[2,64,8], index: 0, kind: input, shape index: {}]   ;;  %s3036_s3 = inlined_call_operand.vmem [shape: f32[8,8], index: 3, kind: input, shape index: {}]   ;;  %s3037_s1 = inlined_call_operand.vmem [shape: f32[2,128,8], index: 1, kind: input, shape index: {}]   ;;  %s3038_s4 = inlined_call_operand.vmem [shape: f32[8,8], index: 4, kind: input, shape index: {}]   ;;  %s3039_s5 = inlined_call_operand.vmem [shape: f32[1,8], index: 5, kind: input, shape index: {}]   ;;  %s3040_s6 = inlined_call_operand.vmem [shape: f32[1,8], index: 6, kind: input, shape index: {}]   ;;  %s3041_s7 = inlined_call_operand.vmem [shape: f32[1,8], index: 7, kind: input, shape index: {}]   ;;  %s3042_s8 = inlined_call_operand.vmem [shape: f32[2,64,8], index: 8, kind: output, shape index: {}]  }
   0x1   :  { %v77_v0 = vld [vmem:[%s3034_s2] sm:$0xff]  ;;  %v38_v2 = vld [vmem:[%s3035_s0 + $0x48] sm:$0xff]  ;;  %v39_v4 = vld [vmem:[%s3035_s0 + $0x50] sm:$0xff] }
   0x2   :  { %v37_v1 = vld [vmem:[%s3035_s0 + $0x40] sm:$0xff]  ;;  %2341 = vmatprep.subr.mxu1 %v77_v0  ;;  %1879 = vmatprep.subr.mxu0 %v77_v0  ;;  %v40_v5 = vld [vmem:[%s3035_s0 + $0x58] sm:$0xff]  ;;  %v42_v7 = vld [vmem:[%s3035_s0 + $0x68] sm:$0xff] }
   0x3   :  { %1893 = vmatprep.mubr.msk.f32.mxu1 %vm85_vm0, %v37_v1  ;;  %v279_v3 = vld [vmem:[%s3036_s3] sm:$0xff]  ;;  %2342 = vmatpush3.msra.mxu1 %v77_v0  ;;  %v43_v8 = vld [vmem:[%s3035_s0 + $0x70] sm:$0xff]  ;;  %v44_v9 = vld [vmem:[%s3035_s0 + $0x78] sm:$0xff] }
   0x4   :  { %1894 = vmatmul.mubr.msk.f32.vlgmr.msra.gmra.mrb[0].mxu1 %vm85_vm0, %v38_v2  ;;  %1905 = vmatprep.subr.mxu1 %v279_v3  ;;  %v41_v6 = vld [vmem:[%s3035_s0 + $0x60] sm:$0xff]  ;;  %v30_v11 = vld [vmem:[%s3035_s0 + $0x8] sm:$0xff]  ;;  %v31_v12 = vld [vmem:[%s3035_s0 + $0x10] sm:$0xff] }
   0x5   :  { %1906 = vmatpush3.msra.mxu1 %v279_v3  ;;  %1896 = vmatprep.mubr.msk.f32.mxu1 %vm85_vm0, %v39_v4  ;;  %v29_v10 = vld [vmem:[%s3035_s0] sm:$0xff]  ;;  %v32_v14 = vld [vmem:[%s3035_s0 + $0x18] sm:$0xff]  ;;  %v46_v15 = vld [vmem:[%s3037_s1 + $0x8] sm:$0xff] }
   0x6   :  { %1880 = vmatpush3.msra.mxu0 %v77_v0  ;;  %v45_v13 = vld [vmem:[%s3037_s1] sm:$0xff]  ;;  %1881 = vmatprep.mubr.msk.f32.mxu0 %vm85_vm0, %v29_v10  ;;  %v47_v18 = vld [vmem:[%s3037_s1 + $0x10] sm:$0xff]  ;;  %v34_v19 = vld [vmem:[%s3035_s0 + $0x28] sm:$0xff] }
   0x7   :  { %1882 = vmatmul.mubr.msk.f32.vlgmr.msra.gmra.mrb[0].mxu0 %vm85_vm0, %v30_v11  ;;  %v33_v16 = vld [vmem:[%s3035_s0 + $0x20] sm:$0xff]  ;;  %v48_v20 = vld [vmem:[%s3037_s1 + $0x18] sm:$0xff]  ;;  %v35_v21 = vld [vmem:[%s3035_s0 + $0x30] sm:$0xff] }
   0x8   :  { %1897 = vmatmul.mubr.msk.f32.gmra.mrb[2].mxu1 %vm85_vm0, %v40_v5  ;;  %1884 = vmatprep.mubr.msk.f32.mxu0 %vm85_vm0, %v31_v12  ;;  %v608_v17 = vld [vmem:[%s3038_s4] sm:$0xff]  ;;  %v36_v23 = vld [vmem:[%s3035_s0 + $0x38] sm:$0xff]  ;;  %v50_v24 = vld [vmem:[%s3037_s1 + $0x28] sm:$0xff] }
   0x9   :  { %1899 = vmatprep.mubr.msk.f32.mxu1 %vm85_vm0, %v41_v6  ;;  %1955 = vmatprep.subr.mxu0 %v608_v17  ;;  %v49_v22 = vld [vmem:[%s3037_s1 + $0x20] sm:$0xff]  ;;  %v51_v25 = vld [vmem:[%s3037_s1 + $0x30] sm:$0xff]  ;;  %v52_v26 = vld [vmem:[%s3037_s1 + $0x38] sm:$0xff] }
   0xa   :  { %1956 = vmatpush3.msra.mxu0 %v608_v17  ;;  %v53_v27 = vld [vmem:[%s3037_s1 + $0x40] sm:$0xff]  ;;  %v54_v28 = vld [vmem:[%s3037_s1 + $0x48] sm:$0xff]  ;;  %v55_v29 = vld [vmem:[%s3037_s1 + $0x50] sm:$0xff] }
   0xb   :  { %1885 = vmatmul.mubr.msk.f32.gmra.mrb[2].mxu0 %vm85_vm0, %v32_v14  ;;  %v56_v30 = vld [vmem:[%s3037_s1 + $0x58] sm:$0xff]  ;;  %v57_v31 = vld [vmem:[%s3037_s1 + $0x60] sm:$0xff]  ;;  %v58_v32 = vld [vmem:[%s3037_s1 + $0x68] sm:$0xff] }
   0xc   :  { %1900 = vmatmul.mubr.msk.f32.gmra.mrb[4].mxu1 %vm85_vm0, %v42_v7  ;;  %1887 = vmatprep.mubr.msk.f32.mxu0 %vm85_vm0, %v33_v16  ;;  %v59_v33 = vld [vmem:[%s3037_s1 + $0x70] sm:$0xff]  ;;  %v60_v34 = vld [vmem:[%s3037_s1 + $0x78] sm:$0xff]  ;;  %v61_v35 = vld [vmem:[%s3037_s1 + $0x80] sm:$0xff] }
   0xd   :  { %1902 = vmatprep.mubr.msk.f32.mxu1 %vm85_vm0, %v43_v8  ;;  %v62_v36 = vld [vmem:[%s3037_s1 + $0x88] sm:$0xff]  ;;  %v63_v37 = vld [vmem:[%s3037_s1 + $0x90] sm:$0xff]  ;;  %v64_v38 = vld [vmem:[%s3037_s1 + $0x98] sm:$0xff] }
   0xe   :  { %v65_v39 = vld [vmem:[%s3037_s1 + $0xa0] sm:$0xff]  ;;  %v66_v40 = vld [vmem:[%s3037_s1 + $0xa8] sm:$0xff]  ;;  %v67_v41 = vld [vmem:[%s3037_s1 + $0xb0] sm:$0xff] }
   0xf   :  { %1888 = vmatmul.mubr.msk.f32.gmra.mrb[4].mxu0 %vm85_vm0, %v34_v19  ;;  %v68_v42 = vld [vmem:[%s3037_s1 + $0xb8] sm:$0xff]  ;;  %v69_v43 = vld [vmem:[%s3037_s1 + $0xc0] sm:$0xff]  ;;  %v70_v44 = vld [vmem:[%s3037_s1 + $0xc8] sm:$0xff] }
  0x10   :  { %1903 = vmatmul.mubr.msk.f32.gmra.mrb[6].mxu1 %vm85_vm0, %v44_v9  ;;  %1890 = vmatprep.mubr.msk.f32.mxu0 %vm85_vm0, %v35_v21  ;;  %v71_v45 = vld [vmem:[%s3037_s1 + $0xd0] sm:$0xff]  ;;  %v72_v46 = vld [vmem:[%s3037_s1 + $0xd8] sm:$0xff]  ;;  %v73_v47 = vld [vmem:[%s3037_s1 + $0xe0] sm:$0xff] }
  0x11   :  { %1907 = vmatprep.mubr.msk.f32.mxu1 %vm85_vm0, %v45_v13  ;;  %v74_v48 = vld [vmem:[%s3037_s1 + $0xe8] sm:$0xff]  ;;  %v75_v49 = vld [vmem:[%s3037_s1 + $0xf0] sm:$0xff]  ;;  %v76_v50 = vld [vmem:[%s3037_s1 + $0xf8] sm:$0xff] }
  0x12   :  { %v1569_v51 = vld [vmem:[%s3039_s5] ss:$0 sm:$0xff]  ;;  %vm2719_vm1 = vmpackc.low %vm85_vm0, %vm85_vm0 }
  0x13   :  { %1891 = vmatmul.mubr.msk.f32.gmra.mrb[6].mxu0 %vm85_vm0, %v36_v23  ;;  %v2708_v8 = vld [vmem:[%s3040_s6] ss:$0 sm:$0xff] }
  0x14   :  { %1908 = vmatmul.mubr.msk.f32.vlgmr.msra.gmra.mrb[8].mxu1 %vm85_vm0, %v46_v15  ;;  %1957 = vmatprep.mubr.msk.f32.mxu0 %vm85_vm0, %v45_v13 }
  0x15   :  { %1910 = vmatprep.mubr.msk.f32.mxu1 %vm85_vm0, %v47_v18 }
  0x17   :  { %1958 = vmatmul.mubr.msk.f32.vlgmr.msra.gmra.mrb[8].mxu0 %vm85_vm0, %v46_v15 }
  0x18   :  { %1911 = vmatmul.mubr.msk.f32.gmra.mrb[10].mxu1 %vm85_vm0, %v48_v20  ;;  %1960 = vmatprep.mubr.msk.f32.mxu0 %vm85_vm0, %v47_v18 }
  0x19   :  { %1913 = vmatprep.mubr.msk.f32.mxu1 %vm85_vm0, %v49_v22 }
  0x1b   :  { %1961 = vmatmul.mubr.msk.f32.gmra.mrb[10].mxu0 %vm85_vm0, %v48_v20 }
  0x1c   :  { %1914 = vmatmul.mubr.msk.f32.gmra.mrb[12].mxu1 %vm85_vm0, %v50_v24  ;;  %1963 = vmatprep.mubr.msk.f32.mxu0 %vm85_vm0, %v49_v22 }
  0x1d   :  { %1916 = vmatprep.mubr.msk.f32.mxu1 %vm85_vm0, %v51_v25 }
  0x1f   :  { %1964 = vmatmul.mubr.msk.f32.gmra.mrb[12].mxu0 %vm85_vm0, %v50_v24 }
  0x20   :  { %1917 = vmatmul.mubr.msk.f32.gmra.mrb[14].mxu1 %vm85_vm0, %v52_v26  ;;  %1966 = vmatprep.mubr.msk.f32.mxu0 %vm85_vm0, %v51_v25 }
  0x21   :  { %1919 = vmatprep.mubr.msk.f32.mxu1 %vm85_vm0, %v53_v27 }
  0x23   :  { %1967 = vmatmul.mubr.msk.f32.gmra.mrb[14].mxu0 %vm85_vm0, %v52_v26 }
  0x24   :  { %1920 = vmatmul.mubr.msk.f32.gmra.mrb[16].mxu1 %vm85_vm0, %v54_v28  ;;  %1969 = vmatprep.mubr.msk.f32.mxu0 %vm85_vm0, %v53_v27 }
  0x25   :  { %1922 = vmatprep.mubr.msk.f32.mxu1 %vm85_vm0, %v55_v29 }
  0x27   :  { %1970 = vmatmul.mubr.msk.f32.gmra.mrb[16].mxu0 %vm85_vm0, %v54_v28 }
  0x28   :  { %1923 = vmatmul.mubr.msk.f32.gmra.mrb[18].mxu1 %vm85_vm0, %v56_v30  ;;  %1972 = vmatprep.mubr.msk.f32.mxu0 %vm85_vm0, %v55_v29 }
  0x29   :  { %1925 = vmatprep.mubr.msk.f32.mxu1 %vm85_vm0, %v57_v31 }
  0x2b   :  { %1973 = vmatmul.mubr.msk.f32.gmra.mrb[18].mxu0 %vm85_vm0, %v56_v30 }
  0x2c   :  { %1926 = vmatmul.mubr.msk.f32.gmra.mrb[20].mxu1 %vm85_vm0, %v58_v32  ;;  %1975 = vmatprep.mubr.msk.f32.mxu0 %vm85_vm0, %v57_v31 }
  0x2d   :  { %1928 = vmatprep.mubr.msk.f32.mxu1 %vm85_vm0, %v59_v33 }
  0x2f   :  { %1976 = vmatmul.mubr.msk.f32.gmra.mrb[20].mxu0 %vm85_vm0, %v58_v32 }
  0x30   :  { %1929 = vmatmul.mubr.msk.f32.gmra.mrb[22].mxu1 %vm85_vm0, %v60_v34  ;;  %1978 = vmatprep.mubr.msk.f32.mxu0 %vm85_vm0, %v59_v33 }
  0x31   :  { %1931 = vmatprep.mubr.msk.f32.mxu1 %vm85_vm0, %v61_v35 }
  0x33   :  { %1979 = vmatmul.mubr.msk.f32.gmra.mrb[22].mxu0 %vm85_vm0, %v60_v34 }
  0x34   :  { %1932 = vmatmul.mubr.msk.f32.gmra.mrb[24].mxu1 %vm85_vm0, %v62_v36  ;;  %1981 = vmatprep.mubr.msk.f32.mxu0 %vm85_vm0, %v61_v35  ;;  %v2741_v35 = vld [vmem:[%s3041_s7] ss:$0 sm:$0xff] }
  0x35   :  { %1934 = vmatprep.mubr.msk.f32.mxu1 %vm85_vm0, %v63_v37 }
  0x37   :  { %1982 = vmatmul.mubr.msk.f32.gmra.mrb[24].mxu0 %vm85_vm0, %v62_v36 }
  0x38   :  { %1935 = vmatmul.mubr.msk.f32.gmra.mrb[26].mxu1 %vm85_vm0, %v64_v38  ;;  %1984 = vmatprep.mubr.msk.f32.mxu0 %vm85_vm0, %v63_v37 }
  0x39   :  { %1937 = vmatprep.mubr.msk.f32.mxu1 %vm85_vm0, %v65_v39 }
  0x3b   :  { %1985 = vmatmul.mubr.msk.f32.gmra.mrb[26].mxu0 %vm85_vm0, %v64_v38 }
  0x3c   :  { %1938 = vmatmul.mubr.msk.f32.gmra.mrb[28].mxu1 %vm85_vm0, %v66_v40  ;;  %1987 = vmatprep.mubr.msk.f32.mxu0 %vm85_vm0, %v65_v39 }
  0x3d   :  { %1940 = vmatprep.mubr.msk.f32.mxu1 %vm85_vm0, %v67_v41 }
  0x3f   :  { %1988 = vmatmul.mubr.msk.f32.gmra.mrb[28].mxu0 %vm85_vm0, %v66_v40 }
  0x40   :  { %1941 = vmatmul.mubr.msk.f32.gmra.mrb[30].mxu1 %vm85_vm0, %v68_v42  ;;  %1990 = vmatprep.mubr.msk.f32.mxu0 %vm85_vm0, %v67_v41 }
  0x41   :  { %1943 = vmatprep.mubr.msk.f32.mxu1 %vm85_vm0, %v69_v43 }
  0x43   :  { %1991 = vmatmul.mubr.msk.f32.gmra.mrb[30].mxu0 %vm85_vm0, %v68_v42 }
  0x44   :  { %1944 = vmatmul.mubr.msk.f32.gmra.mrb[32].mxu1 %vm85_vm0, %v70_v44  ;;  %1993 = vmatprep.mubr.msk.f32.mxu0 %vm85_vm0, %v69_v43 }
  0x45   :  { %1946 = vmatprep.mubr.msk.f32.mxu1 %vm85_vm0, %v71_v45 }
  0x47   :  { %1994 = vmatmul.mubr.msk.f32.gmra.mrb[32].mxu0 %vm85_vm0, %v70_v44 }
  0x48   :  { %1947 = vmatmul.mubr.msk.f32.gmra.mrb[34].mxu1 %vm85_vm0, %v72_v46  ;;  %1996 = vmatprep.mubr.msk.f32.mxu0 %vm85_vm0, %v71_v45 }
  0x49   :  { %1949 = vmatprep.mubr.msk.f32.mxu1 %vm85_vm0, %v73_v47 }
  0x4b   :  { %1997 = vmatmul.mubr.msk.f32.gmra.mrb[34].mxu0 %vm85_vm0, %v72_v46 }
  0x4c   :  { %1950 = vmatmul.mubr.msk.f32.gmra.mrb[36].mxu1 %vm85_vm0, %v74_v48  ;;  %1999 = vmatprep.mubr.msk.f32.mxu0 %vm85_vm0, %v73_v47 }
  0x4d   :  { %1952 = vmatprep.mubr.msk.f32.mxu1 %vm85_vm0, %v75_v49 }
  0x4f   :  { %2000 = vmatmul.mubr.msk.f32.gmra.mrb[36].mxu0 %vm85_vm0, %v74_v48 }
  0x50   :  { %1953 = vmatmul.mubr.msk.f32.gmra.mrb[38].mxu1 %vm85_vm0, %v76_v50  ;;  %2002 = vmatprep.mubr.msk.f32.mxu0 %vm85_vm0, %v75_v49 }
  0x53   :  { %2003 = vmatmul.mubr.msk.f32.gmra.mrb[38].mxu0 %vm85_vm0, %v76_v50 }
  0xd7   :  { %v1895_v52 = vpop.f32.mrb[0].mxu1 }
  0xd8   :  { %v2688_v53 = vadd.f32 %v1895_v52, %v1569_v51  ;;  %v240_v54 = vpop.f32.mrb[1].mxu1 }
  0xd9   :  { %v241_v55 = vadd.f32 %v1569_v51, %v240_v54 }
  0xda   :  { %v1883_v0 = vpop.f32.mrb[0].mxu0 }
  0xdb   :  { %v1898_v56 = vpop.f32.mrb[2].mxu1  ;;  %2081 = vmatprep.mubr.msk.f32.mxu0 %vm85_vm0, %v241_v55  ;;  %v2699_v2 = vadd.f32 %v1883_v0, %v1569_v51  ;;  %v200_v3 = vpop.f32.mrb[1].mxu0 }
  0xdc   :  { %v2691_v57 = vadd.f32 %v1898_v56, %v1569_v51  ;;  %v250_v58 = vpop.f32.mrb[3].mxu1  ;;  %v201_v6 = vadd.f32 %v1569_v51, %v200_v3 }
  0xdd   :  { %v2693_v59 = vadd.f32 %v1569_v51, %v250_v58 }
  0xde   :  { %2037 = vmatprep.mubr.msk.f32.mxu1 %vm85_vm0, %v201_v6  ;;  %v1886_v9 = vpop.f32.mrb[2].mxu0 }
  0xdf   :  { %v1901_v60 = vpop.f32.mrb[4].mxu1  ;;  %v2711_v11 = vadd.f32 %v1886_v9, %v1569_v51  ;;  %v210_v12 = vpop.f32.mrb[3].mxu0 }
  0xe0   :  { %v2695_v61 = vadd.f32 %v1901_v60, %v1569_v51  ;;  %v260_v62 = vpop.f32.mrb[5].mxu1  ;;  %v2714_v15 = vadd.f32 %v1569_v51, %v210_v12 }
  0xe1   :  { %v2697_v63 = vadd.f32 %v1569_v51, %v260_v62 }
  0xe2   :  { %v1889_v18 = vpop.f32.mrb[4].mxu0 }
  0xe3   :  { %v1904_v1 = vpop.f32.mrb[6].mxu1  ;;  %v2723_v21 = vadd.f32 %v1889_v18, %v1569_v51  ;;  %v220_v22 = vpop.f32.mrb[5].mxu0 }
  0xe4   :  { %v2701_v4 = vadd.f32 %v1904_v1, %v1569_v51  ;;  %v270_v5 = vpop.f32.mrb[7].mxu1  ;;  %v2726_v25 = vadd.f32 %v1569_v51, %v220_v22 }
  0xe5   :  { %v2703_v7 = vadd.f32 %v1569_v51, %v270_v5 }
  0xe6   :  { %v1892_v27 = vpop.f32.mrb[6].mxu0 }
  0xe7   :  { %v1909_v10 = vpop.f32.mrb[8].mxu1  ;;  %v2733_v30 = vadd.f32 %v1892_v27, %v1569_v51  ;;  %v230_v31 = vpop.f32.mrb[7].mxu0 }
  0xe8   :  { %v455_v13 = vadd.f32 %v1909_v10, %v2708_v8  ;;  %v449_v14 = vpop.f32.mrb[9].mxu1  ;;  %v2736_v34 = vadd.f32 %v1569_v51, %v230_v31 }
  0xe9   :  { %v450_v16 = vadd.f32 %v2708_v8, %v449_v14 }
  0xea   :  { %v1959_v37 = vpop.f32.mrb[8].mxu0 }
  0xeb   :  { %v2181_v19 = vpack.c.bf16 %v455_v13, %v450_v16  ;;  %v1912_v20 = vpop.f32.mrb[10].mxu1  ;;  %v688_v40 = vadd.f32 %v1959_v37, %v2741_v35  ;;  %v682_v41 = vpop.f32.mrb[9].mxu0 }
  0xec   :  { %v465_v23 = vadd.f32 %v1912_v20, %v2708_v8  ;;  %v459_v24 = vpop.f32.mrb[11].mxu1  ;;  %v683_v44 = vadd.f32 %v2741_v35, %v682_v41 }
  0xed   :  { %v460_v26 = vadd.f32 %v2708_v8, %v459_v24  ;;  %2183 = vmatprep.subr.msk.bf16.mxu1 %vm2719_vm1, %v2181_v19 }
  0xee   :  { %2186 = vmatpush3.bf16.xpose.msk.msra.mxu1 %vm2719_vm1, %v2181_v19  ;;  %v2752_v46 = vpack.c.bf16 %v688_v40, %v683_v44  ;;  %v1962_v47 = vpop.f32.mrb[10].mxu0 }
  0xef   :  { %v2187_v28 = vpack.c.bf16 %v465_v23, %v460_v26  ;;  %v1915_v29 = vpop.f32.mrb[12].mxu1  ;;  %v698_v50 = vadd.f32 %v1962_v47, %v2741_v35  ;;  %v692_v51 = vpop.f32.mrb[11].mxu0 }
  0xf0   :  { %v475_v32 = vadd.f32 %v1915_v29, %v2708_v8  ;;  %v469_v33 = vpop.f32.mrb[13].mxu1  ;;  %v693_v55 = vadd.f32 %v2741_v35, %v692_v51 }
  0xf1   :  { %v470_v36 = vadd.f32 %v2708_v8, %v469_v33  ;;  %2189 = vmatprep.subr.msk.bf16.mxu1 %vm2719_vm1, %v2187_v28 }
  0xf2   :  { %v2760_v58 = vpack.c.bf16 %v698_v50, %v693_v55  ;;  %v1965_v60 = vpop.f32.mrb[12].mxu0 }
  0xf3   :  { %v2193_v38 = vpack.c.bf16 %v475_v32, %v470_v36  ;;  %v1918_v39 = vpop.f32.mrb[14].mxu1  ;;  %v708_v1 = vadd.f32 %v1965_v60, %v2741_v35  ;;  %v702_v3 = vpop.f32.mrb[13].mxu0 }
  0xf4   :  { %v485_v42 = vadd.f32 %v1918_v39, %v2708_v8  ;;  %v479_v43 = vpop.f32.mrb[15].mxu1  ;;  %v703_v9 = vadd.f32 %v2741_v35, %v702_v3 }
  0xf5   :  { %v480_v45 = vadd.f32 %v2708_v8, %v479_v43 }
  0xf6   :  { %2192 = vmatpush3.bf16.xpose.msk.msra.mxu1 %vm2719_vm1, %v2187_v28  ;;  %v2768_v12 = vpack.c.bf16 %v708_v1, %v703_v9  ;;  %v1968_v13 = vpop.f32.mrb[14].mxu0 }
  0xf7   :  { %v2199_v48 = vpack.c.bf16 %v485_v42, %v480_v45  ;;  %v1921_v49 = vpop.f32.mrb[16].mxu1  ;;  %2195 = vmatprep.subr.msk.bf16.mxu1 %vm2719_vm1, %v2193_v38  ;;  %v718_v18 = vadd.f32 %v1968_v13, %v2741_v35  ;;  %v712_v19 = vpop.f32.mrb[15].mxu0 }
  0xf8   :  { %v495_v52 = vadd.f32 %v1921_v49, %v2708_v8  ;;  %v489_v54 = vpop.f32.mrb[17].mxu1  ;;  %v713_v23 = vadd.f32 %v2741_v35, %v712_v19 }
  0xf9   :  { %v490_v56 = vadd.f32 %v2708_v8, %v489_v54 }
  0xfa   :  { %v2778_v26 = vpack.c.bf16 %v718_v18, %v713_v23  ;;  %v1971_v27 = vpop.f32.mrb[16].mxu0 }
  0xfb   :  { %v2205_v62 = vpack.c.bf16 %v495_v52, %v490_v56  ;;  %v1924_v0 = vpop.f32.mrb[18].mxu1  ;;  %v728_v31 = vadd.f32 %v1971_v27, %v2741_v35  ;;  %v722_v32 = vpop.f32.mrb[17].mxu0 }
  0xfc   :  { %v505_v5 = vadd.f32 %v1924_v0, %v2708_v8  ;;  %v499_v6 = vpop.f32.mrb[19].mxu1  ;;  %v723_v37 = vadd.f32 %v2741_v35, %v722_v32 }
  0xfd   :  { %v500_v10 = vadd.f32 %v2708_v8, %v499_v6 }
  0xfe   :  { %2198 = vmatpush3.bf16.xpose.msk.msra.mxu1 %vm2719_vm1, %v2193_v38  ;;  %v2788_v39 = vpack.c.bf16 %v728_v31, %v723_v37  ;;  %v1974_v40 = vpop.f32.mrb[18].mxu0 }
  0xff   :  { %v2770_v14 = vpack.c.bf16 %v505_v5, %v500_v10  ;;  %v1927_v16 = vpop.f32.mrb[20].mxu1  ;;  %2201 = vmatprep.subr.msk.bf16.mxu1 %vm2719_vm1, %v2199_v48  ;;  %v738_v43 = vadd.f32 %v1974_v40, %v2741_v35  ;;  %v732_v44 = vpop.f32.mrb[19].mxu0 }
 0x100   :  { %v515_v20 = vadd.f32 %v1927_v16, %v2708_v8  ;;  %v509_v22 = vpop.f32.mrb[21].mxu1  ;;  %v733_v49 = vadd.f32 %v2741_v35, %v732_v44 }
 0x101   :  { %v510_v24 = vadd.f32 %v2708_v8, %v509_v22 }
 0x102   :  { %v1977_v51 = vpop.f32.mrb[20].mxu0 }
 0x103   :  { %v2780_v28 = vpack.c.bf16 %v515_v20, %v510_v24  ;;  %v1930_v29 = vpop.f32.mrb[22].mxu1  ;;  %v748_v55 = vadd.f32 %v1977_v51, %v2741_v35  ;;  %v742_v56 = vpop.f32.mrb[21].mxu0 }
 0x104   :  { %v525_v33 = vadd.f32 %v1930_v29, %v2708_v8  ;;  %v519_v36 = vpop.f32.mrb[23].mxu1  ;;  %v743_v1 = vadd.f32 %v2741_v35, %v742_v56 }
 0x105   :  { %v520_v38 = vadd.f32 %v2708_v8, %v519_v36 }
 0x106   :  { %2204 = vmatpush3.bf16.xpose.msk.msra.mxu1 %vm2719_vm1, %v2199_v48  ;;  %v2798_v48 = vpack.c.bf16 %v738_v43, %v733_v49  ;;  %v2810_v5 = vpack.c.bf16 %v748_v55, %v743_v1  ;;  %v1980_v6 = vpop.f32.mrb[22].mxu0 }
 0x107   :  { %v2790_v41 = vpack.c.bf16 %v525_v33, %v520_v38  ;;  %v1933_v42 = vpop.f32.mrb[24].mxu1  ;;  %2207 = vmatprep.subr.msk.bf16.mxu1 %vm2719_vm1, %v2205_v62  ;;  %v758_v13 = vadd.f32 %v1980_v6, %v2741_v35  ;;  %v752_v16 = vpop.f32.mrb[23].mxu0 }
 0x108   :  { %v535_v45 = vadd.f32 %v1933_v42, %v2708_v8  ;;  %v529_v47 = vpop.f32.mrb[25].mxu1 }
 0x109   :  { %v530_v50 = vadd.f32 %v2708_v8, %v529_v47 }
 0x10a   :  { %v1983_v23 = vpop.f32.mrb[24].mxu0 }
 0x10b   :  { %v2229_v52 = vpack.c.bf16 %v535_v45, %v530_v50  ;;  %v1936_v54 = vpop.f32.mrb[26].mxu1  ;;  %v768_v29 = vadd.f32 %v1983_v23, %v2741_v35  ;;  %v762_v31 = vpop.f32.mrb[25].mxu0 }
 0x10c   :  { %v545_v60 = vadd.f32 %v1936_v54, %v2708_v8  ;;  %v539_v0 = vpop.f32.mrb[27].mxu1  ;;  %v763_v36 = vadd.f32 %v2741_v35, %v762_v31 }
 0x10d   :  { %2231 = vmatprep.subr.msk.bf16.mxu0 %vm2719_vm1, %v2229_v52  ;;  %v540_v3 = vadd.f32 %v2708_v8, %v539_v0 }
 0x10e   :  { %2210 = vmatpush3.bf16.xpose.msk.msra.mxu1 %vm2719_vm1, %v2205_v62  ;;  %2234 = vmatpush3.bf16.xpose.msk.msra.mxu0 %vm2719_vm1, %v2229_v52  ;;  %v753_v62 = vadd.f32 %v2741_v35, %v752_v16  ;;  %v2832_v38 = vpack.c.bf16 %v768_v29, %v763_v36 }
 0x10f   :  { %v2235_v9 = vpack.c.bf16 %v545_v60, %v540_v3  ;;  %2213 = vmatprep.subr.msk.bf16.mxu1 %vm2719_vm1, %v2770_v14  ;;  %v1939_v10 = vpop.f32.mrb[28].mxu1 }
 0x110   :  { %v555_v18 = vadd.f32 %v1939_v10, %v2708_v8  ;;  %v549_v19 = vpop.f32.mrb[29].mxu1  ;;  %v2821_v22 = vpack.c.bf16 %v758_v13, %v753_v62 }
 0x111   :  { %2237 = vmatprep.subr.msk.bf16.mxu0 %vm2719_vm1, %v2235_v9  ;;  %v550_v20 = vadd.f32 %v2708_v8, %v549_v19 }
 0x113   :  { %v2241_v24 = vpack.c.bf16 %v555_v18, %v550_v20  ;;  %v1942_v27 = vpop.f32.mrb[30].mxu1 }
 0x114   :  { %v565_v32 = vadd.f32 %v1942_v27, %v2708_v8  ;;  %v559_v33 = vpop.f32.mrb[31].mxu1 }
 0x115   :  { %v560_v37 = vadd.f32 %v2708_v8, %v559_v33 }
 0x116   :  { %2216 = vmatpush3.bf16.xpose.msk.msra.mxu1 %vm2719_vm1, %v2770_v14  ;;  %2240 = vmatpush3.bf16.xpose.msk.msra.mxu0 %vm2719_vm1, %v2235_v9 }
 0x117   :  { %2219 = vmatprep.subr.msk.bf16.mxu1 %vm2719_vm1, %v2780_v28  ;;  %2243 = vmatprep.subr.msk.bf16.mxu0 %vm2719_vm1, %v2241_v24  ;;  %v2247_v40 = vpack.c.bf16 %v565_v32, %v560_v37  ;;  %v1945_v42 = vpop.f32.mrb[32].mxu1 }
 0x118   :  { %v575_v43 = vadd.f32 %v1945_v42, %v2708_v8  ;;  %v569_v44 = vpop.f32.mrb[33].mxu1 }
 0x119   :  { %v570_v45 = vadd.f32 %v2708_v8, %v569_v44 }
 0x11b   :  { %v2253_v14 = vpack.c.bf16 %v575_v43, %v570_v45  ;;  %v1948_v47 = vpop.f32.mrb[34].mxu1 }
 0x11c   :  { %v585_v49 = vadd.f32 %v1948_v47, %v2708_v8  ;;  %v579_v50 = vpop.f32.mrb[35].mxu1 }
 0x11d   :  { %v580_v51 = vadd.f32 %v2708_v8, %v579_v50 }
 0x11e   :  { %2222 = vmatpush3.bf16.xpose.msk.msra.mxu1 %vm2719_vm1, %v2780_v28  ;;  %2246 = vmatpush3.bf16.xpose.msk.msra.mxu0 %vm2719_vm1, %v2241_v24 }
 0x11f   :  { %2225 = vmatprep.subr.msk.bf16.mxu1 %vm2719_vm1, %v2790_v41  ;;  %2249 = vmatprep.subr.msk.bf16.mxu0 %vm2719_vm1, %v2247_v40  ;;  %v2259_v52 = vpack.c.bf16 %v585_v49, %v580_v51  ;;  %v1951_v54 = vpop.f32.mrb[36].mxu1 }
 0x120   :  { %v595_v55 = vadd.f32 %v1951_v54, %v2708_v8  ;;  %v589_v56 = vpop.f32.mrb[37].mxu1 }
 0x121   :  { %v590_v60 = vadd.f32 %v2708_v8, %v589_v56 }
 0x123   :  { %v2265_v0 = vpack.c.bf16 %v595_v55, %v590_v60  ;;  %v1954_v1 = vpop.f32.mrb[38].mxu1 }
 0x124   :  { %v605_v28 = vadd.f32 %v1954_v1, %v2708_v8  ;;  %v599_v3 = vpop.f32.mrb[39].mxu1 }
 0x125   :  { %v600_v6 = vadd.f32 %v2708_v8, %v599_v3 }
 0x126   :  { %2228 = vmatpush3.bf16.xpose.msk.msra.mxu1 %vm2719_vm1, %v2790_v41  ;;  %2252 = vmatpush3.bf16.xpose.msk.msra.mxu0 %vm2719_vm1, %v2247_v40 }
 0x127   :  { %2255 = vmatprep.subr.msk.bf16.mxu0 %vm2719_vm1, %v2253_v14  ;;  %v2271_v9 = vpack.c.bf16 %v605_v28, %v600_v6  ;;  %2278 = vmatprep.subr.bf16.mxu1 %v2752_v46 }
 0x12d   :  { %2038 = vmatmul.mubr.msk.f32.vlgmr.msra.gmra.mrb[40].mxu1 %vm85_vm0, %v2699_v2 }
 0x12e   :  { %2258 = vmatpush3.bf16.xpose.msk.msra.mxu0 %vm2719_vm1, %v2253_v14  ;;  %2040 = vmatprep.mubr.msk.f32.mxu1 %vm85_vm0, %v2714_v15 }
 0x12f   :  { %2261 = vmatprep.subr.msk.bf16.mxu0 %vm2719_vm1, %v2259_v52  ;;  %2280 = vmatpush3.bf16.msra.mxu1 %v2752_v46 }
 0x130   :  { %2282 = vmatprep.subr.bf16.mxu1 %v2760_v58 }
 0x131   :  { %2041 = vmatmul.mubr.msk.f32.gmra.mrb[42].mxu1 %vm85_vm0, %v2711_v11 }
 0x132   :  { %2043 = vmatprep.mubr.msk.f32.mxu1 %vm85_vm0, %v2726_v25 }
 0x133   :  { %2284 = vmatpush3.bf16.msra.mxu1 %v2760_v58 }
 0x134   :  { %2286 = vmatprep.subr.bf16.mxu1 %v2768_v12 }
 0x135   :  { %2044 = vmatmul.mubr.msk.f32.gmra.mrb[44].mxu1 %vm85_vm0, %v2723_v21 }
 0x136   :  { %2264 = vmatpush3.bf16.xpose.msk.msra.mxu0 %vm2719_vm1, %v2259_v52  ;;  %2046 = vmatprep.mubr.msk.f32.mxu1 %vm85_vm0, %v2736_v34 }
 0x137   :  { %2267 = vmatprep.subr.msk.bf16.mxu0 %vm2719_vm1, %v2265_v0  ;;  %2288 = vmatpush3.bf16.msra.mxu1 %v2768_v12 }
 0x138   :  { %2290 = vmatprep.subr.bf16.mxu1 %v2778_v26 }
 0x139   :  { %2047 = vmatmul.mubr.msk.f32.gmra.mrb[46].mxu1 %vm85_vm0, %v2733_v30 }
 0x13b   :  { %2292 = vmatpush3.bf16.msra.mxu1 %v2778_v26 }
 0x13c   :  { %2294 = vmatprep.subr.bf16.mxu1 %v2788_v39 }
 0x13e   :  { %2270 = vmatpush3.bf16.xpose.msk.msra.mxu0 %vm2719_vm1, %v2265_v0 }
 0x13f   :  { %2273 = vmatprep.subr.msk.bf16.mxu0 %vm2719_vm1, %v2271_v9  ;;  %2296 = vmatpush3.bf16.msra.mxu1 %v2788_v39 }
 0x140   :  { %2298 = vmatprep.subr.bf16.mxu1 %v2798_v48 }
 0x143   :  { %2300 = vmatpush3.bf16.msra.mxu1 %v2798_v48 }
 0x144   :  { %2302 = vmatprep.subr.bf16.mxu1 %v2810_v5 }
 0x146   :  { %2276 = vmatpush3.bf16.xpose.msk.msra.mxu0 %vm2719_vm1, %v2271_v9 }
 0x147   :  { %2304 = vmatpush3.bf16.msra.mxu1 %v2810_v5  ;;  %2310 = vmatprep.subr.bf16.mxu0 %v2832_v38 }
 0x148   :  { %2306 = vmatprep.subr.bf16.mxu1 %v2821_v22 }
 0x14b   :  { %2308 = vmatpush3.bf16.msra.mxu1 %v2821_v22 }
 0x14d   :  { %2082 = vmatmul.mubr.msk.f32.vlgmr.msra.gmra.mrb[40].mxu0 %vm85_vm0, %v2688_v53  ;;  %v1986_v53 = vpop.f32.mrb[26].mxu0 }
 0x14e   :  { %2084 = vmatprep.mubr.msk.f32.mxu0 %vm85_vm0, %v2693_v59  ;;  %2312 = vmatpush3.bf16.msra.mxu0 %v2832_v38  ;;  %v778_v59 = vadd.f32 %v1986_v53, %v2741_v35  ;;  %v772_v2 = vpop.f32.mrb[27].mxu0 }
 0x14f   :  { %v773_v8 = vadd.f32 %v2741_v35, %v772_v2 }
 0x151   :  { %2085 = vmatmul.mubr.msk.f32.gmra.mrb[42].mxu0 %vm85_vm0, %v2691_v57  ;;  %v2313_v11 = vpack.c.bf16 %v778_v59, %v773_v8  ;;  %v1989_v57 = vpop.f32.mrb[28].mxu0 }
 0x152   :  { %2087 = vmatprep.mubr.msk.f32.mxu0 %vm85_vm0, %v2697_v63  ;;  %v788_v15 = vadd.f32 %v1989_v57, %v2741_v35  ;;  %v782_v63 = vpop.f32.mrb[29].mxu0 }
 0x153   :  { %v783_v17 = vadd.f32 %v2741_v35, %v782_v63  ;;  %2314 = vmatprep.subr.bf16.mxu0 %v2313_v11 }
 0x154   :  { %2316 = vmatpush3.bf16.msra.mxu0 %v2313_v11 }
 0x155   :  { %2088 = vmatmul.mubr.msk.f32.gmra.mrb[44].mxu0 %vm85_vm0, %v2695_v61  ;;  %v2317_v61 = vpack.c.bf16 %v788_v15, %v783_v17 }
 0x156   :  { %2090 = vmatprep.mubr.msk.f32.mxu0 %vm85_vm0, %v2703_v7  ;;  %v1992_v7 = vpop.f32.mrb[30].mxu0 }
 0x157   :  { %v798_v21 = vadd.f32 %v1992_v7, %v2741_v35  ;;  %2318 = vmatprep.subr.bf16.mxu0 %v2317_v61 }
 0x158   :  { %2320 = vmatpush3.bf16.msra.mxu0 %v2317_v61 }
 0x159   :  { %2091 = vmatmul.mubr.msk.f32.gmra.mrb[46].mxu0 %vm85_vm0, %v2701_v4  ;;  %v792_v4 = vpop.f32.mrb[31].mxu0 }
 0x15a   :  { %v793_v25 = vadd.f32 %v2741_v35, %v792_v4  ;;  %v1995_v30 = vpop.f32.mrb[32].mxu0 }
 0x15b   :  { %v808_v34 = vadd.f32 %v1995_v30, %v2741_v35  ;;  %v802_v46 = vpop.f32.mrb[33].mxu0 }
 0x15c   :  { %v2321_v58 = vpack.c.bf16 %v798_v21, %v793_v25  ;;  %v803_v12 = vadd.f32 %v2741_v35, %v802_v46  ;;  %v1998_v26 = vpop.f32.mrb[34].mxu0 }
 0x15d   :  { %v818_v39 = vadd.f32 %v1998_v26, %v2741_v35  ;;  %v812_v41 = vpop.f32.mrb[35].mxu0 }
 0x15e   :  { %v2325_v48 = vpack.c.bf16 %v808_v34, %v803_v12  ;;  %2322 = vmatprep.subr.bf16.mxu0 %v2321_v58  ;;  %v813_v5 = vadd.f32 %v2741_v35, %v812_v41  ;;  %v2001_v10 = vpop.f32.mrb[36].mxu0 }
 0x15f   :  { %2324 = vmatpush3.bf16.msra.mxu0 %v2321_v58  ;;  %v828_v13 = vadd.f32 %v2001_v10, %v2741_v35  ;;  %v822_v16 = vpop.f32.mrb[37].mxu0 }
 0x160   :  { %v2329_v18 = vpack.c.bf16 %v818_v39, %v813_v5  ;;  %2326 = vmatprep.subr.bf16.mxu0 %v2325_v48  ;;  %v823_v19 = vadd.f32 %v2741_v35, %v822_v16  ;;  %v2004_v62 = vpop.f32.mrb[38].mxu0 }
 0x161   :  { %v838_v20 = vadd.f32 %v2004_v62, %v2741_v35  ;;  %v832_v22 = vpop.f32.mrb[39].mxu0 }
 0x162   :  { %v2333_v23 = vpack.c.bf16 %v828_v13, %v823_v19  ;;  %v833_v24 = vadd.f32 %v2741_v35, %v832_v22 }
 0x163   :  { %2328 = vmatpush3.bf16.msra.mxu0 %v2325_v48 }
 0x164   :  { %2330 = vmatprep.subr.bf16.mxu0 %v2329_v18  ;;  %v2337_v27 = vpack.c.bf16 %v838_v20, %v833_v24 }
 0x167   :  { %2332 = vmatpush3.bf16.msra.mxu0 %v2329_v18 }
 0x168   :  { %2334 = vmatprep.subr.bf16.mxu0 %v2333_v23 }
 0x16b   :  { %2336 = vmatpush3.bf16.msra.mxu0 %v2333_v23 }
 0x16c   :  { %2338 = vmatprep.subr.bf16.mxu0 %v2337_v27 }
 0x16f   :  { %2340 = vmatpush3.bf16.msra.mxu0 %v2337_v27 }
 0x200   :  { %v2039_v29 = vpop.f32.mrb[40].mxu1 }
 0x201   :  { %1197 = vmax.xlane.f32.xlu1 %v2039_v29  ;;  %v979_v31 = vpop.f32.mrb[41].mxu1 }
 0x202   :  { %1195 = vmax.xlane.f32.xlu0 %v979_v31 }
 0x204   :  { %v2042_v32 = vpop.f32.mrb[42].mxu1 }
 0x205   :  { %v989_v33 = vpop.f32.mrb[43].mxu1 }
 0x206   :  { %1201 = vmax.xlane.f32.xlu0 %v2042_v32 }
 0x208   :  { %v2938_v36 = vpop.f32.mrb[44].mxu1 }
 0x209   :  { %v2940_v37 = vpop.f32.mrb[45].mxu1 }
 0x20a   :  { %1199 = vmax.xlane.f32.xlu0 %v989_v33 }
 0x20c   :  { %v2942_v35 = vpop.f32.mrb[46].mxu1 }
 0x20d   :  { %v2944_v38 = vpop.f32.mrb[47].mxu1 }
 0x220   :  { %v2083_v40 = vpop.f32.mrb[40].mxu0 }
 0x221   :  { %v1156_v42 = vpop.f32.mrb[41].mxu0  ;;  %1213 = vmax.xlane.f32.xlu1 %v2083_v40 }
 0x222   :  { %1211 = vmax.xlane.f32.xlu0 %v1156_v42 }
 0x224   :  { %v2086_v43 = vpop.f32.mrb[42].mxu0 }
 0x225   :  { %v1166_v44 = vpop.f32.mrb[43].mxu0  ;;  %1217 = vmax.xlane.f32.xlu1 %v2086_v43 }
 0x226   :  { %1203 = vmax.xlane.f32.xlu0 %v2940_v37 }
 0x228   :  { %v2947_v45 = vpop.f32.mrb[44].mxu0 }
 0x229   :  { %v2949_v14 = vpop.f32.mrb[45].mxu0  ;;  %1215 = vmax.xlane.f32.xlu1 %v1166_v44 }
 0x22a   :  { %1205 = vmax.xlane.f32.xlu0 %v2938_v36 }
 0x22c   :  { %v2952_v47 = vpop.f32.mrb[46].mxu0 }
 0x22d   :  { %v2954_v49 = vpop.f32.mrb[47].mxu0  ;;  %1221 = vmax.xlane.f32.xlu1 %v2947_v45 }
 0x22e   :  { %1207 = vmax.xlane.f32.xlu0 %v2944_v38 }
 0x231   :  { %1219 = vmax.xlane.f32.xlu1 %v2949_v14 }
 0x232   :  { %1209 = vmax.xlane.f32.xlu0 %v2942_v35 }
 0x235   :  { %1223 = vmax.xlane.f32.xlu1 %v2954_v49 }
 0x239   :  { %1225 = vmax.xlane.f32.xlu1 %v2952_v47 }
 0x28e   :  { %v1198_v50 = vpop.xlane.xlu1 %1197 }
 0x28f   :  { %v1228_v51 = vsub.f32 %v2039_v29, %v1198_v50  ;;  %v1196_v52 = vpop.xlane.xlu0 %1195 }
 0x290   :  { %v1227_v54 = vsub.f32 %v979_v31, %v1196_v52 }
 0x291   :  { %v1245_v55 = vmul.f32 1.442695, %v1228_v51 }
 0x292   :  { %v1243_v56 = vmul.f32 1.442695, %v1227_v54 }
 0x293   :  { %2343 = vpow2.f32 %v1245_v55  ;;  %v1202_v60 = vpop.xlane.xlu0 %1201 }
 0x294   :  { %2345 = vpow2.f32 %v1243_v56  ;;  %v1230_v0 = vsub.f32 %v2042_v32, %v1202_v60 }
 0x296   :  { %v1249_v1 = vmul.f32 1.442695, %v1230_v0 }
 0x297   :  { %v1200_v28 = vpop.xlane.xlu0 %1199 }
 0x298   :  { %2347 = vpow2.f32 %v1249_v1  ;;  %v1229_v3 = vsub.f32 %v989_v33, %v1200_v28 }
 0x29a   :  { %v1247_v6 = vmul.f32 1.442695, %v1229_v3 }
 0x29c   :  { %2349 = vpow2.f32 %v1247_v6 }
 0x29d   :  { %v2344_v9 = vpop.eup %2343 }
 0x29e   :  { %v2346_v53 = vpop.eup %2345  ;;  %1277 = vadd.xlane.f32.xlu1 %v2344_v9 }
 0x29f   :  { %2125 = vmatprep.mubr.f32.mxu1 %v2346_v53  ;;  %1275 = vadd.xlane.f32.xlu0 %v2346_v53 }
 0x2a0   :  { %2126 = vmatmul.mubr.f32.vlgmr.msra.gmra.mrb[48].mxu1 %v2344_v9 }
 0x2a2   :  { %v2348_v59 = vpop.eup %2347 }
 0x2a3   :  { %1281 = vadd.xlane.f32.xlu1 %v2348_v59 }
 0x2a6   :  { %v2350_v2 = vpop.eup %2349 }
 0x2a7   :  { %2128 = vmatprep.mubr.f32.mxu1 %v2350_v2  ;;  %1279 = vadd.xlane.f32.xlu0 %v2350_v2 }
 0x2a8   :  { %2129 = vmatmul.mubr.f32.gmra.mrb[50].mxu1 %v2348_v59 }
 0x2ae   :  { %v1214_v8 = vpop.xlane.xlu1 %1213 }
 0x2af   :  { %v1236_v11 = vsub.f32 %v2083_v40, %v1214_v8  ;;  %v1212_v57 = vpop.xlane.xlu0 %1211 }
 0x2b0   :  { %v1235_v15 = vsub.f32 %v1156_v42, %v1212_v57 }
 0x2b1   :  { %v1261_v63 = vmul.f32 1.442695, %v1236_v11 }
 0x2b2   :  { %v1259_v17 = vmul.f32 1.442695, %v1235_v15  ;;  %v1218_v61 = vpop.xlane.xlu1 %1217 }
 0x2b3   :  { %v1238_v7 = vsub.f32 %v2086_v43, %v1218_v61  ;;  %v1204_v21 = vpop.xlane.xlu0 %1203 }
 0x2b4   :  { %2351 = vpow2.f32 %v1259_v17  ;;  %v1231_v4 = vsub.f32 %v2940_v37, %v1204_v21 }
 0x2b5   :  { %2353 = vpow2.f32 %v1261_v63  ;;  %v1265_v25 = vmul.f32 1.442695, %v1238_v7 }
 0x2b6   :  { %v1251_v30 = vmul.f32 1.442695, %v1231_v4  ;;  %v1216_v34 = vpop.xlane.xlu1 %1215 }
 0x2b7   :  { %v1237_v46 = vsub.f32 %v1166_v44, %v1216_v34  ;;  %v1206_v58 = vpop.xlane.xlu0 %1205 }
 0x2b8   :  { %2355 = vpow2.f32 %v1251_v30  ;;  %v1232_v12 = vsub.f32 %v2938_v36, %v1206_v58 }
 0x2b9   :  { %v1263_v26 = vmul.f32 1.442695, %v1237_v46  ;;  %2357 = vpow2.f32 %v1265_v25 }
 0x2ba   :  { %v1253_v39 = vmul.f32 1.442695, %v1232_v12  ;;  %v1222_v41 = vpop.xlane.xlu1 %1221 }
 0x2bb   :  { %2359 = vpow2.f32 %v1263_v26  ;;  %v1240_v48 = vsub.f32 %v2947_v45, %v1222_v41  ;;  %v1208_v5 = vpop.xlane.xlu0 %1207 }
 0x2bc   :  { %2361 = vpow2.f32 %v1253_v39  ;;  %v1233_v10 = vsub.f32 %v2944_v38, %v1208_v5 }
 0x2bd   :  { %v1269_v16 = vmul.f32 1.442695, %v1240_v48 }
 0x2be   :  { %v2352_v13 = vpop.eup %2351  ;;  %v1255_v18 = vmul.f32 1.442695, %v1233_v10  ;;  %v1220_v19 = vpop.xlane.xlu1 %1219 }
 0x2bf   :  { %v2354_v62 = vpop.eup %2353  ;;  %v1239_v20 = vsub.f32 %v2949_v14, %v1220_v19  ;;  %2169 = vmatprep.mubr.f32.mxu0 %v2352_v13  ;;  %v1210_v22 = vpop.xlane.xlu0 %1209 }
 0x2c0   :  { %2363 = vpow2.f32 %v1255_v18  ;;  %v1234_v23 = vsub.f32 %v2942_v35, %v1210_v22  ;;  %2170 = vmatmul.mubr.f32.vlgmr.msra.gmra.mrb[48].mxu0 %v2354_v62 }
 0x2c1   :  { %v1267_v24 = vmul.f32 1.442695, %v1239_v20  ;;  %2365 = vpow2.f32 %v1269_v16 }
 0x2c2   :  { %v2356_v27 = vpop.eup %2355  ;;  %v1257_v29 = vmul.f32 1.442695, %v1234_v23  ;;  %v1224_v31 = vpop.xlane.xlu1 %1223 }
 0x2c3   :  { %2367 = vpow2.f32 %v1267_v24  ;;  %v1241_v32 = vsub.f32 %v2954_v49, %v1224_v31  ;;  %2131 = vmatprep.mubr.f32.mxu1 %v2356_v27  ;;  %1283 = vadd.xlane.f32.xlu0 %v2356_v27  ;;  %v2358_v33 = vpop.eup %2357 }
 0x2c4   :  { %2369 = vpow2.f32 %v1257_v29 }
 0x2c5   :  { %v2360_v36 = vpop.eup %2359  ;;  %v1271_v37 = vmul.f32 1.442695, %v1241_v32 }
 0x2c6   :  { %v2362_v38 = vpop.eup %2361  ;;  %v1226_v40 = vpop.xlane.xlu1 %1225  ;;  %2172 = vmatprep.mubr.f32.mxu0 %v2360_v36 }
 0x2c7   :  { %2371 = vpow2.f32 %v1271_v37  ;;  %v1242_v35 = vsub.f32 %v2952_v47, %v1226_v40  ;;  %2173 = vmatmul.mubr.f32.gmra.mrb[50].mxu0 %v2358_v33  ;;  %1285 = vadd.xlane.f32.xlu1 %v2362_v38 }
 0x2c8   :  { %2132 = vmatmul.mubr.f32.gmra.mrb[52].mxu1 %v2362_v38 }
 0x2c9   :  { %v1273_v42 = vmul.f32 1.442695, %v1242_v35 }
 0x2ca   :  { %v2364_v43 = vpop.eup %2363 }
 0x2cb   :  { %2373 = vpow2.f32 %v1273_v42  ;;  %1287 = vadd.xlane.f32.xlu0 %v2364_v43  ;;  %2134 = vmatprep.mubr.f32.mxu1 %v2364_v43  ;;  %v2366_v44 = vpop.eup %2365 }
 0x2cd   :  { %v2368_v45 = vpop.eup %2367 }
 0x2ce   :  { %v2370_v14 = vpop.eup %2369  ;;  %2175 = vmatprep.mubr.f32.mxu0 %v2368_v45 }
 0x2cf   :  { %2176 = vmatmul.mubr.f32.gmra.mrb[52].mxu0 %v2366_v44  ;;  %1291 = vadd.xlane.f32.xlu0 %v2352_v13 }
 0x2d0   :  { %1289 = vadd.xlane.f32.xlu1 %v2370_v14  ;;  %2135 = vmatmul.mubr.f32.gmra.mrb[54].mxu1 %v2370_v14 }
 0x2d1   :  { %v2372_v49 = vpop.eup %2371 }
 0x2d2   :  { %2178 = vmatprep.mubr.f32.mxu0 %v2372_v49 }
 0x2d3   :  { %1295 = vadd.xlane.f32.xlu0 %v2360_v36 }
 0x2d4   :  { %1293 = vadd.xlane.f32.xlu1 %v2354_v62 }
 0x2d5   :  { %v2374_v47 = vpop.eup %2373 }
 0x2d6   :  { %2179 = vmatmul.mubr.f32.gmra.mrb[54].mxu0 %v2374_v47 }
 0x2d7   :  { %1299 = vadd.xlane.f32.xlu0 %v2368_v45 }
 0x2d8   :  { %1297 = vadd.xlane.f32.xlu1 %v2358_v33 }
 0x2db   :  { %1303 = vadd.xlane.f32.xlu0 %v2372_v49 }
 0x2dc   :  { %1301 = vadd.xlane.f32.xlu1 %v2366_v44 }
 0x2e0   :  { %1305 = vadd.xlane.f32.xlu1 %v2374_v47 }
 0x32b   :  { %v1278_v50 = vpop.xlane.xlu1 %1277 }
 0x32c   :  { %v1276_v51 = vpop.xlane.xlu0 %1275  ;;  %2375 = vrcp.f32 %v1278_v50 }
 0x32d   :  { %2377 = vrcp.f32 %v1276_v51 }
 0x330   :  { %v1282_v52 = vpop.xlane.xlu1 %1281 }
 0x331   :  { %2379 = vrcp.f32 %v1282_v52 }
 0x334   :  { %v1280_v54 = vpop.xlane.xlu0 %1279 }
 0x335   :  { %2381 = vrcp.f32 %v1280_v54 }
 0x336   :  { %v2376_v55 = vpop.eup %2375 }
 0x337   :  { %v2378_v60 = vpop.eup %2377 }
 0x33b   :  { %v2380_v3 = vpop.eup %2379 }
 0x33f   :  { %v2382_v9 = vpop.eup %2381 }
 0x350   :  { %v1284_v8 = vpop.xlane.xlu0 %1283 }
 0x354   :  { %v1286_v53 = vpop.xlane.xlu1 %1285 }
 0x358   :  { %v1288_v15 = vpop.xlane.xlu0 %1287 }
 0x35c   :  { %v1292_v17 = vpop.xlane.xlu0 %1291 }
 0x35d   :  { %v1290_v57 = vpop.xlane.xlu1 %1289 }
 0x360   :  { %v1296_v7 = vpop.xlane.xlu0 %1295 }
 0x361   :  { %v1294_v63 = vpop.xlane.xlu1 %1293 }
 0x362   :  { %2383 = vrcp.f32 %v1294_v63 }
 0x363   :  { %2385 = vrcp.f32 %v1292_v17 }
 0x364   :  { %2387 = vrcp.f32 %v1286_v53  ;;  %v1300_v12 = vpop.xlane.xlu0 %1299 }
 0x365   :  { %v1298_v61 = vpop.xlane.xlu1 %1297 }
 0x366   :  { %2389 = vrcp.f32 %v1298_v61 }
 0x367   :  { %2391 = vrcp.f32 %v1296_v7 }
 0x368   :  { %2393 = vrcp.f32 %v1284_v8  ;;  %v1304_v22 = vpop.xlane.xlu0 %1303 }
 0x369   :  { %v1302_v46 = vpop.xlane.xlu1 %1301  ;;  %2395 = vrcp.f32 %v1290_v57 }
 0x36a   :  { %2397 = vrcp.f32 %v1302_v46 }
 0x36b   :  { %2399 = vrcp.f32 %v1300_v12 }
 0x36c   :  { %v2384_v21 = vpop.eup %2383  ;;  %2401 = vrcp.f32 %v1288_v15 }
 0x36d   :  { %v2386_v25 = vpop.eup %2385  ;;  %v1306_v18 = vpop.xlane.xlu1 %1305 }
 0x36e   :  { %v2388_v26 = vpop.eup %2387  ;;  %2403 = vrcp.f32 %v1306_v18 }
 0x36f   :  { %2405 = vrcp.f32 %v1304_v22 }
 0x370   :  { %v2390_v39 = vpop.eup %2389 }
 0x371   :  { %v2392_v48 = vpop.eup %2391 }
 0x372   :  { %v2394_v16 = vpop.eup %2393 }
 0x373   :  { %v2127_v56 = vpop.f32.mrb[48].mxu1  ;;  %v2396_v24 = vpop.eup %2395 }
 0x374   :  { %v1534_v0 = vmul.f32 %v2376_v55, %v2127_v56  ;;  %v1373_v1 = vpop.f32.mrb[49].mxu1  ;;  %v2398_v27 = vpop.eup %2397 }
 0x375   :  { %v1533_v28 = vmul.f32 %v2378_v60, %v1373_v1  ;;  %v2400_v31 = vpop.eup %2399 }
 0x376   :  { %1550 = vst.msk [vmem:[%s3042_s8 + $0x8] sm:$0xff] %vm85_vm0, %v1534_v0  ;;  %v2402_v37 = vpop.eup %2401 }
 0x377   :  { %1549 = vst.msk [vmem:[%s3042_s8] sm:$0xff] %vm85_vm0, %v1533_v28 }
 0x378   :  { %v2404_v43 = vpop.eup %2403 }
 0x379   :  { %v2406_v45 = vpop.eup %2405 }
 0x37b   :  { %v2130_v6 = vpop.f32.mrb[50].mxu1 }
 0x37c   :  { %v1536_v59 = vmul.f32 %v2380_v3, %v2130_v6  ;;  %v1383_v2 = vpop.f32.mrb[51].mxu1 }
 0x37d   :  { %v1535_v11 = vmul.f32 %v2382_v9, %v1383_v2 }
 0x37e   :  { %1552 = vst.msk [vmem:[%s3042_s8 + $0x18] sm:$0xff] %vm85_vm0, %v1536_v59 }
 0x37f   :  { %1551 = vst.msk [vmem:[%s3042_s8 + $0x10] sm:$0xff] %vm85_vm0, %v1535_v11 }
 0x393   :  { %v2171_v4 = vpop.f32.mrb[48].mxu0 }
 0x394   :  { %v1542_v30 = vmul.f32 %v2384_v21, %v2171_v4  ;;  %v1478_v34 = vpop.f32.mrb[49].mxu0 }
 0x395   :  { %v1541_v58 = vmul.f32 %v2386_v25, %v1478_v34 }
 0x396   :  { %1558 = vst.msk [vmem:[%s3042_s8 + $0x48] sm:$0xff] %vm85_vm0, %v1542_v30 }
 0x397   :  { %1557 = vst.msk [vmem:[%s3042_s8 + $0x40] sm:$0xff] %vm85_vm0, %v1541_v58 }
 0x39a   :  { %v2174_v41 = vpop.f32.mrb[50].mxu0 }
 0x39b   :  { %v2133_v5 = vpop.f32.mrb[52].mxu1  ;;  %v1544_v10 = vmul.f32 %v2390_v39, %v2174_v41  ;;  %v1488_v13 = vpop.f32.mrb[51].mxu0 }
 0x39c   :  { %v1538_v19 = vmul.f32 %v2388_v26, %v2133_v5  ;;  %v1393_v62 = vpop.f32.mrb[53].mxu1  ;;  %v1543_v20 = vmul.f32 %v2392_v48, %v1488_v13 }
 0x39d   :  { %1560 = vst.msk [vmem:[%s3042_s8 + $0x58] sm:$0xff] %vm85_vm0, %v1544_v10  ;;  %v1537_v23 = vmul.f32 %v2394_v16, %v1393_v62 }
 0x39e   :  { %1554 = vst.msk [vmem:[%s3042_s8 + $0x28] sm:$0xff] %vm85_vm0, %v1538_v19  ;;  %1559 = vst.msk [vmem:[%s3042_s8 + $0x50] sm:$0xff] %vm85_vm0, %v1543_v20 }
 0x39f   :  { %1553 = vst.msk [vmem:[%s3042_s8 + $0x20] sm:$0xff] %vm85_vm0, %v1537_v23 }
 0x3a2   :  { %v2177_v29 = vpop.f32.mrb[52].mxu0 }
 0x3a3   :  { %v2136_v32 = vpop.f32.mrb[54].mxu1  ;;  %v1546_v33 = vmul.f32 %v2398_v27, %v2177_v29  ;;  %v1498_v36 = vpop.f32.mrb[53].mxu0 }
 0x3a4   :  { %v1540_v38 = vmul.f32 %v2396_v24, %v2136_v32  ;;  %v1403_v40 = vpop.f32.mrb[55].mxu1  ;;  %v1545_v35 = vmul.f32 %v2400_v31, %v1498_v36 }
 0x3a5   :  { %1562 = vst.msk [vmem:[%s3042_s8 + $0x68] sm:$0xff] %vm85_vm0, %v1546_v33  ;;  %v1539_v42 = vmul.f32 %v2402_v37, %v1403_v40 }
 0x3a6   :  { %1556 = vst.msk [vmem:[%s3042_s8 + $0x38] sm:$0xff] %vm85_vm0, %v1540_v38  ;;  %1561 = vst.msk [vmem:[%s3042_s8 + $0x60] sm:$0xff] %vm85_vm0, %v1545_v35 }
 0x3a7   :  { %1555 = vst.msk [vmem:[%s3042_s8 + $0x30] sm:$0xff] %vm85_vm0, %v1539_v42 }
 0x3a9   :  { %v2180_v44 = vpop.f32.mrb[54].mxu0 }
 0x3aa   :  { %v1548_v14 = vmul.f32 %v2404_v43, %v2180_v44  ;;  %v1508_v49 = vpop.f32.mrb[55].mxu0 }
 0x3ab   :  { %v1547_v47 = vmul.f32 %v2406_v45, %v1508_v49 }
 0x3ac   :  { %1564 = vst.msk [vmem:[%s3042_s8 + $0x78] sm:$0xff] %vm85_vm0, %v1548_v14 }
 0x3ad   :  { %1563 = vst.msk [vmem:[%s3042_s8 + $0x70] sm:$0xff] %vm85_vm0, %v1547_v47 }

</bundles_post_ra>
